<compile_context>
chip_gen: v7x
topology: tpu7x:2x2x1
jax: 0.10.0
libtpu: 0.0.40
codegen_flags: <defaults>
</compile_context>

<pallas_src>
import functools

import jax
import jax.numpy as jnp
from jax.experimental import pallas as pl
from jax.experimental.pallas import tpu as pltpu


def _round_up(v, m):
    return (v + m - 1) // m * m


# ---------------------------------------------------------------------------
# Kernel
# ---------------------------------------------------------------------------
def q_kernel(x_ref, a_ref, w1_ref, b1_ref, w2_ref, b2_ref, wfc_ref, bfc_ref,
             out_ref, *, obs_dim, fuse_concat):
    """One batch tile of q = Wfc·relu(W2·relu(W1·[x;a] + b1) + b2) + bfc."""
    if fuse_concat:
        # Single K = obs+act MXU pass; the concat is VPU/XLU work on other
        # VLIW slots and hides under the MXU.  Cast to bf16 in-kernel.
        h0 = jnp.concatenate([x_ref[...], a_ref[...]], axis=-1).astype(jnp.bfloat16)
        h1 = jnp.dot(h0, w1_ref[...], preferred_element_type=jnp.float32)
    else:
        # Fallback: split layer-1 matmul (always lowerable).
        w1 = w1_ref[...]
        h1 = (jnp.dot(x_ref[...].astype(jnp.bfloat16), w1[:obs_dim, :],
                      preferred_element_type=jnp.float32)
              + jnp.dot(a_ref[...].astype(jnp.bfloat16), w1[obs_dim:, :],
                        preferred_element_type=jnp.float32))
    h1 = jnp.maximum(h1 + b1_ref[...], 0.0)

    h2 = jnp.dot(h1.astype(w2_ref.dtype), w2_ref[...],
                 preferred_element_type=jnp.float32) + b2_ref[...]
    h2 = jnp.maximum(h2, 0.0)

    # Final Linear(hidden -> 1): VPU multiply + lane reduction instead of a
    # near-empty N=1 MXU pass.
    q = jnp.sum(h2 * wfc_ref[...], axis=-1, keepdims=True) + bfc_ref[...]
    out_ref[...] = q.astype(out_ref.dtype)


# ---------------------------------------------------------------------------
# Tiling / VMEM heuristics
# ---------------------------------------------------------------------------
def _vmem_limit_bytes():
    try:
        cap = int(pltpu.get_tpu_info().vmem_capacity_bytes)
    except Exception:
        cap = 64 * 1024 * 1024  # conservative default: v7x per-TensorCore VMEM
    # Leave headroom below physical capacity; never go below a sane floor.
    return max(32 * 1024 * 1024, min(int(cap * 0.75), 100 * 1024 * 1024))


def _tb_cap_from_vmem(hidden, in_dim, vmem_limit):
    """Largest batch tile whose activations + double-buffered inputs fit."""
    lane = 128
    in_bytes = 2 * 2 * 4 * max(lane, _round_up(in_dim, lane))  # x,a f32, double-buffered
    act_bytes = 10 * hidden + 2 * _round_up(in_dim, lane)      # h1 f32+bf16, h2 f32, concat bf16
    per_row = in_bytes + act_bytes + 16                        # + tiny (TB,1) output
    cap = (int(vmem_limit * 0.5) // per_row) // 16 * 16        # 50% budget for tiles
    return max(16, cap)


def _choose_batch_tile(batch, tb_max):
    """Even split of the batch into ~equal tiles, multiple of 16."""
    num_tiles = max(1, pl.cdiv(batch, tb_max))
    tb = _round_up(pl.cdiv(batch, num_tiles), 16)
    return min(tb, _round_up(batch, 16))


# ---------------------------------------------------------------------------
# Parameter prep (one-time, hoisted out of the per-call path)
# ---------------------------------------------------------------------------
def prepare_params(params):
    """Cast/reshape module parameters once (bf16 MXU weights, f32 biases)."""
    w1, b1, w2, b2, wfc, bfc = params
    return (
        jnp.asarray(w1, jnp.bfloat16),                    # (obs+act, h1)
        jnp.asarray(b1, jnp.float32).reshape(1, -1),      # (1, h1)
        jnp.asarray(w2, jnp.bfloat16),                    # (h1, h2)
        jnp.asarray(b2, jnp.float32).reshape(1, -1),      # (1, h2)
        jnp.asarray(wfc, jnp.float32).reshape(1, -1),     # (1, h2)  (row vector)
        jnp.asarray(bfc, jnp.float32).reshape(1, 1),      # (1, 1)
    )


# ---------------------------------------------------------------------------
# Forward wrapper
# ---------------------------------------------------------------------------
def continuous_mean_q_forward(x, action, prepared, *, tb_max=4096):
    """Pallas implementation of ContinuousMeanQFunction.forward -> (B, 1) f32."""
    w1, b1, w2, b2, wfc_row, bfc = prepared
    batch, obs_dim = x.shape
    act_dim = action.shape[1]
    in_dim, hidden = w1.shape
    assert in_dim == obs_dim + act_dim

    vmem_limit = _vmem_limit_bytes()
    tb = _choose_batch_tile(batch,
                            min(tb_max, _tb_cap_from_vmem(hidden, in_dim, vmem_limit)))
    grid = (pl.cdiv(batch, tb),)

    def resident(arr):
        # Same (0, 0) block every grid step -> weights stay VMEM-resident.
        return pl.BlockSpec(arr.shape, lambda i: (0, 0))

    def build(fuse_concat):
        kern = functools.partial(q_kernel, obs_dim=obs_dim, fuse_concat=fuse_concat)
        return pl.pallas_call(
            kern,
            out_shape=jax.ShapeDtypeStruct((batch, 1), jnp.float32),
            grid=grid,
            in_specs=[
                pl.BlockSpec((tb, obs_dim), lambda i: (i, 0)),   # x tile (f32)
                pl.BlockSpec((tb, act_dim), lambda i: (i, 0)),   # action tile (f32)
                resident(w1), resident(b1), resident(w2), resident(b2),
                resident(wfc_row), resident(bfc),
            ],
            out_specs=pl.BlockSpec((tb, 1), lambda i: (i, 0)),
            compiler_params=pltpu.CompilerParams(
                dimension_semantics=("parallel",),   # shard batch tiles across TCs
                vmem_limit_bytes=vmem_limit,
            ),
        )

    xf = x.astype(jnp.float32)          # no-op when already f32
    af = action.astype(jnp.float32)
    args = (xf, af, w1, b1, w2, b2, wfc_row, bfc)
    try:
        return build(fuse_concat=True)(*args)
    except Exception:
        # Minor-dim concat not supported by this Mosaic build -> split-dot path.
        return build(fuse_concat=False)(*args)


# ---------------------------------------------------------------------------
# Init + references
# ---------------------------------------------------------------------------
def init_params(key, obs_dim, action_dim, hidden):
    """PyTorch-Linear-style init: U(-1/sqrt(fan_in), 1/sqrt(fan_in))."""
    dims = [obs_dim + action_dim] + list(hidden)
    params = []
    keys = jax.random.split(key, 2 * len(hidden) + 2)
    ki = 0
    for i in range(len(hidden)):
        fan_in = dims[i]
        bound = 1.0 / float(jnp.sqrt(fan_in))
        w = jax.random.uniform(keys[ki], (dims[i], dims[i + 1]),
                               minval=-bound, maxval=bound, dtype=jnp.float32)
        b = jax.random.uniform(keys[ki + 1], (1, dims[i + 1]),
                               minval=-bound, maxval=bound, dtype=jnp.float32)
        params += [w, b]
        ki += 2
    fan_in = dims[-1]
    bound = 1.0 / float(jnp.sqrt(fan_in))
    wfc = jax.random.uniform(keys[ki], (dims[-1], 1),
                             minval=-bound, maxval=bound, dtype=jnp.float32)
    bfc = jax.random.uniform(keys[ki + 1], (1, 1),
                             minval=-bound, maxval=bound, dtype=jnp.float32)
    params += [wfc, bfc]
    return tuple(params)


def reference_forward_f32(x, action, params):
    """Full-f32 reference matching the original PyTorch module."""
    w1, b1, w2, b2, wfc, bfc = params
    h = jnp.concatenate([x, action], axis=1).astype(jnp.float32)
    h = jnp.maximum(h @ w1 + b1, 0.0)
    h = jnp.maximum(h @ w2 + b2, 0.0)
    return h @ wfc + bfc


def reference_forward_bf16(x, action, prepared):
    """Reference mirroring the kernel's bf16-operand / f32-accumulate casting."""
    w1, b1, w2, b2, wfc_row, bfc = prepared
    h0 = jnp.concatenate([x, action], axis=1).astype(jnp.bfloat16)
    h1 = jnp.maximum(jnp.dot(h0, w1, preferred_element_type=jnp.float32) + b1, 0.0)
    h2 = jnp.maximum(jnp.dot(h1.astype(jnp.bfloat16), w2,
                             preferred_element_type=jnp.float32) + b2, 0.0)
    return jnp.sum(h2 * wfc_row, axis=-1, keepdims=True) + bfc


# ---------------------------------------------------------------------------
# Main (small deterministic correctness check)
# ---------------------------------------------------------------------------
if __name__ == "__main__":
    OBS, ACT = 16, 4
    HIDDEN = (32, 32)

    key = jax.random.PRNGKey(0)
    k_x, k_a, k_p = jax.random.split(key, 3)
    params = init_params(k_p, OBS, ACT, HIDDEN)
    prepared = prepare_params(params)

    # B=48 exercises an exact tile; B=50 exercises the ragged last-block path.
    for B in (48, 50):
        xb = jax.random.normal(jax.random.fold_in(k_x, B), (B, OBS), dtype=jnp.float32)
        ab = jax.random.normal(jax.random.fold_in(k_a, B), (B, ACT), dtype=jnp.float32)

        q = jax.block_until_ready(continuous_mean_q_forward(xb, ab, prepared))

        q_ref_bf16 = reference_forward_bf16(xb, ab, prepared)
        q_ref_f32 = reference_forward_f32(xb, ab, params)

        assert q.shape == (B, 1)
        # Tight check against a reference with identical bf16 casting ...
        assert jnp.allclose(q, q_ref_bf16, atol=1e-2, rtol=1e-2)
        # ... and a loose check against the full-f32 module semantics.
        assert jnp.allclose(q, q_ref_f32, atol=5e-2, rtol=5e-2)

    print("KERNEL_OK")
</pallas_src>

<mosaic_0001>
module attributes {stable_mosaic.version = 11 : i64} {
  func.func @q_kernel(%arg0: i32, %arg1: memref<48x16xf32, #tpu.memory_space<vmem>>, %arg2: memref<48x4xf32, #tpu.memory_space<vmem>>, %arg3: memref<20x32xbf16, #tpu.memory_space<vmem>>, %arg4: memref<1x32xf32, #tpu.memory_space<vmem>>, %arg5: memref<32x32xbf16, #tpu.memory_space<vmem>>, %arg6: memref<1x32xf32, #tpu.memory_space<vmem>>, %arg7: memref<1x32xf32, #tpu.memory_space<vmem>>, %arg8: memref<1x1xf32, #tpu.memory_space<vmem>>, %arg9: memref<48x1xf32, #tpu.memory_space<vmem>>) attributes {dimension_semantics = [#tpu.dimension_semantics<parallel>], iteration_bounds = array<i64: 1>, scalar_prefetch = 0 : i64, scratch_operands = 0 : i64, tpu.core_type = #tpu.core_type<tc>, window_params = [{transform_indices = @transform_0, window_bounds = array<i64: 48, 16>}, {transform_indices = @transform_1, window_bounds = array<i64: 48, 4>}, {pipeline_mode = #tpu.pipeline_mode<synchronous>, transform_indices = @transform_2, window_bounds = array<i64: 20, 32>}, {pipeline_mode = #tpu.pipeline_mode<synchronous>, transform_indices = @transform_3, window_bounds = array<i64: 1, 32>}, {pipeline_mode = #tpu.pipeline_mode<synchronous>, transform_indices = @transform_4, window_bounds = array<i64: 32, 32>}, {pipeline_mode = #tpu.pipeline_mode<synchronous>, transform_indices = @transform_5, window_bounds = array<i64: 1, 32>}, {pipeline_mode = #tpu.pipeline_mode<synchronous>, transform_indices = @transform_6, window_bounds = array<i64: 1, 32>}, {pipeline_mode = #tpu.pipeline_mode<synchronous>, transform_indices = @transform_7, window_bounds = array<i64: 1, 1>}, {transform_indices = @transform_8, window_bounds = array<i64: 48, 1>}]} {
    %c0 = arith.constant 0 : index
    %c0_0 = arith.constant 0 : index
    %0 = vector.load %arg1[%c0, %c0_0] : memref<48x16xf32, #tpu.memory_space<vmem>>, vector<48x16xf32>
    %c0_1 = arith.constant 0 : index
    %c0_2 = arith.constant 0 : index
    %1 = vector.load %arg2[%c0_1, %c0_2] : memref<48x4xf32, #tpu.memory_space<vmem>>, vector<48x4xf32>
    %2 = tpu.concatenate %0, %1 in 1 : vector<48x16xf32>, vector<48x4xf32> -> vector<48x20xf32>
    %3 = arith.truncf %2 : vector<48x20xf32> to vector<48x20xbf16>
    %c0_3 = arith.constant 0 : index
    %c0_4 = arith.constant 0 : index
    %4 = vector.load %arg3[%c0_3, %c0_4] : memref<20x32xbf16, #tpu.memory_space<vmem>>, vector<20x32xbf16>
    %cst = arith.constant dense<0.000000e+00> : vector<48x32xf32>
    %5 = tpu.matmul %3, %4, %cst {dimension_numbers = #tpu.dot_dimension_numbers<[1], [0], [0], [1], [0, 0, 1, 1], [], []>} : vector<48x20xbf16>, vector<20x32xbf16>, vector<48x32xf32> -> vector<48x32xf32>
    %c0_5 = arith.constant 0 : index
    %c0_6 = arith.constant 0 : index
    %6 = vector.load %arg4[%c0_5, %c0_6] : memref<1x32xf32, #tpu.memory_space<vmem>>, vector<1x32xf32>
    %7 = vector.broadcast %6 : vector<1x32xf32> to vector<48x32xf32>
    %8 = arith.addf %5, %7 : vector<48x32xf32>
    %cst_7 = arith.constant 0.000000e+00 : f32
    %9 = vector.broadcast %cst_7 : f32 to vector<48x32xf32>
    %10 = arith.maximumf %8, %9 : vector<48x32xf32>
    %11 = arith.truncf %10 : vector<48x32xf32> to vector<48x32xbf16>
    %c0_8 = arith.constant 0 : index
    %c0_9 = arith.constant 0 : index
    %12 = vector.load %arg5[%c0_8, %c0_9] : memref<32x32xbf16, #tpu.memory_space<vmem>>, vector<32x32xbf16>
    %cst_10 = arith.constant dense<0.000000e+00> : vector<48x32xf32>
    %13 = tpu.matmul %11, %12, %cst_10 {dimension_numbers = #tpu.dot_dimension_numbers<[1], [0], [0], [1], [0, 0, 1, 1], [], []>} : vector<48x32xbf16>, vector<32x32xbf16>, vector<48x32xf32> -> vector<48x32xf32>
    %c0_11 = arith.constant 0 : index
    %c0_12 = arith.constant 0 : index
    %14 = vector.load %arg6[%c0_11, %c0_12] : memref<1x32xf32, #tpu.memory_space<vmem>>, vector<1x32xf32>
    %15 = vector.broadcast %14 : vector<1x32xf32> to vector<48x32xf32>
    %16 = arith.addf %13, %15 : vector<48x32xf32>
    %cst_13 = arith.constant 0.000000e+00 : f32
    %17 = vector.broadcast %cst_13 : f32 to vector<48x32xf32>
    %18 = arith.maximumf %16, %17 : vector<48x32xf32>
    %c0_14 = arith.constant 0 : index
    %c0_15 = arith.constant 0 : index
    %19 = vector.load %arg7[%c0_14, %c0_15] : memref<1x32xf32, #tpu.memory_space<vmem>>, vector<1x32xf32>
    %20 = vector.broadcast %19 : vector<1x32xf32> to vector<48x32xf32>
    %21 = arith.mulf %18, %20 : vector<48x32xf32>
    %cst_16 = arith.constant dense<0.000000e+00> : vector<48xf32>
    %22 = vector.multi_reduction <add>, %21, %cst_16 [1] : vector<48x32xf32> to vector<48xf32>
    %23 = vector.shape_cast %22 : vector<48xf32> to vector<48x1xf32>
    %c0_17 = arith.constant 0 : index
    %c0_18 = arith.constant 0 : index
    %24 = vector.load %arg8[%c0_17, %c0_18] : memref<1x1xf32, #tpu.memory_space<vmem>>, vector<1x1xf32>
    %25 = vector.broadcast %24 : vector<1x1xf32> to vector<48x1xf32>
    %26 = arith.addf %23, %25 : vector<48x1xf32>
    %c0_19 = arith.constant 0 : index
    %c0_20 = arith.constant 0 : index
    %27 = vector.load %arg9[%c0_19, %c0_20] : memref<48x1xf32, #tpu.memory_space<vmem>>, vector<48x1xf32>
    tpu.vector_store %arg9[%c0_19, %c0_20], %26 {strides = array<i32>} : memref<48x1xf32, #tpu.memory_space<vmem>>, vector<48x1xf32>,
    return
  }
  func.func @transform_0(%arg0: i32) -> (i32, i32) {
    %c0_i32 = arith.constant 0 : i32
    %c0_i32_0 = arith.constant 0 : i32
    return %arg0, %c0_i32 : i32, i32
  }
  func.func @transform_1(%arg0: i32) -> (i32, i32) {
    %c0_i32 = arith.constant 0 : i32
    %c0_i32_0 = arith.constant 0 : i32
    return %arg0, %c0_i32 : i32, i32
  }
  func.func @transform_2(%arg0: i32) -> (i32, i32) {
    %c0_i32 = arith.constant 0 : i32
    %c0_i32_0 = arith.constant 0 : i32
    %c0_i32_1 = arith.constant 0 : i32
    return %c0_i32, %c0_i32_0 : i32, i32
  }
  func.func @transform_3(%arg0: i32) -> (i32, i32) {
    %c0_i32 = arith.constant 0 : i32
    %c0_i32_0 = arith.constant 0 : i32
    %c0_i32_1 = arith.constant 0 : i32
    return %c0_i32, %c0_i32_0 : i32, i32
  }
  func.func @transform_4(%arg0: i32) -> (i32, i32) {
    %c0_i32 = arith.constant 0 : i32
    %c0_i32_0 = arith.constant 0 : i32
    %c0_i32_1 = arith.constant 0 : i32
    return %c0_i32, %c0_i32_0 : i32, i32
  }
  func.func @transform_5(%arg0: i32) -> (i32, i32) {
    %c0_i32 = arith.constant 0 : i32
    %c0_i32_0 = arith.constant 0 : i32
    %c0_i32_1 = arith.constant 0 : i32
    return %c0_i32, %c0_i32_0 : i32, i32
  }
  func.func @transform_6(%arg0: i32) -> (i32, i32) {
    %c0_i32 = arith.constant 0 : i32
    %c0_i32_0 = arith.constant 0 : i32
    %c0_i32_1 = arith.constant 0 : i32
    return %c0_i32, %c0_i32_0 : i32, i32
  }
  func.func @transform_7(%arg0: i32) -> (i32, i32) {
    %c0_i32 = arith.constant 0 : i32
    %c0_i32_0 = arith.constant 0 : i32
    %c0_i32_1 = arith.constant 0 : i32
    return %c0_i32, %c0_i32_0 : i32, i32
  }
  func.func @transform_8(%arg0: i32) -> (i32, i32) {
    %c0_i32 = arith.constant 0 : i32
    %c0_i32_0 = arith.constant 0 : i32
    return %arg0, %c0_i32 : i32, i32
  }
}

module attributes {stable_mosaic.version = 11 : i64} {
  func.func @q_kernel(%arg0: i32, %arg1: memref<48x16xf32, #tpu.memory_space<vmem>>, %arg2: memref<48x4xf32, #tpu.memory_space<vmem>>, %arg3: memref<20x32xbf16, #tpu.memory_space<vmem>>, %arg4: memref<1x32xf32, #tpu.memory_space<vmem>>, %arg5: memref<32x32xbf16, #tpu.memory_space<vmem>>, %arg6: memref<1x32xf32, #tpu.memory_space<vmem>>, %arg7: memref<1x32xf32, #tpu.memory_space<vmem>>, %arg8: memref<1x1xf32, #tpu.memory_space<vmem>>, %arg9: memref<48x1xf32, #tpu.memory_space<vmem>>) attributes {dimension_semantics = [#tpu.dimension_semantics<parallel>], iteration_bounds = array<i64: 1>, scalar_prefetch = 0 : i64, scratch_operands = 0 : i64, tpu.core_type = #tpu.core_type<tc>, window_params = [{transform_indices = @transform_0, window_bounds = array<i64: 48, 16>}, {transform_indices = @transform_1, window_bounds = array<i64: 48, 4>}, {pipeline_mode = #tpu.pipeline_mode<synchronous>, transform_indices = @transform_2, window_bounds = array<i64: 20, 32>}, {pipeline_mode = #tpu.pipeline_mode<synchronous>, transform_indices = @transform_3, window_bounds = array<i64: 1, 32>}, {pipeline_mode = #tpu.pipeline_mode<synchronous>, transform_indices = @transform_4, window_bounds = array<i64: 32, 32>}, {pipeline_mode = #tpu.pipeline_mode<synchronous>, transform_indices = @transform_5, window_bounds = array<i64: 1, 32>}, {pipeline_mode = #tpu.pipeline_mode<synchronous>, transform_indices = @transform_6, window_bounds = array<i64: 1, 32>}, {pipeline_mode = #tpu.pipeline_mode<synchronous>, transform_indices = @transform_7, window_bounds = array<i64: 1, 1>}, {transform_indices = @transform_8, window_bounds = array<i64: 48, 1>}]} {
    %c0 = arith.constant 0 : index
    %c0_0 = arith.constant 0 : index
    %0 = vector.load %arg3[%c0, %c0_0] : memref<20x32xbf16, #tpu.memory_space<vmem>>, vector<20x32xbf16>
    %c0_1 = arith.constant 0 : index
    %c0_2 = arith.constant 0 : index
    %1 = vector.load %arg1[%c0_1, %c0_2] : memref<48x16xf32, #tpu.memory_space<vmem>>, vector<48x16xf32>
    %2 = arith.truncf %1 : vector<48x16xf32> to vector<48x16xbf16>
    %3 = vector.extract_strided_slice %0 {offsets = [0, 0], sizes = [16, 32], strides = [1, 1]} : vector<20x32xbf16> to vector<16x32xbf16>
    %cst = arith.constant dense<0.000000e+00> : vector<48x32xf32>
    %4 = tpu.matmul %2, %3, %cst {dimension_numbers = #tpu.dot_dimension_numbers<[1], [0], [0], [1], [0, 0, 1, 1], [], []>} : vector<48x16xbf16>, vector<16x32xbf16>, vector<48x32xf32> -> vector<48x32xf32>
    %c0_3 = arith.constant 0 : index
    %c0_4 = arith.constant 0 : index
    %5 = vector.load %arg2[%c0_3, %c0_4] : memref<48x4xf32, #tpu.memory_space<vmem>>, vector<48x4xf32>
    %6 = arith.truncf %5 : vector<48x4xf32> to vector<48x4xbf16>
    %7 = vector.extract_strided_slice %0 {offsets = [16, 0], sizes = [4, 32], strides = [1, 1]} : vector<20x32xbf16> to vector<4x32xbf16>
    %cst_5 = arith.constant dense<0.000000e+00> : vector<48x32xf32>
    %8 = tpu.matmul %6, %7, %cst_5 {dimension_numbers = #tpu.dot_dimension_numbers<[1], [0], [0], [1], [0, 0, 1, 1], [], []>} : vector<48x4xbf16>, vector<4x32xbf16>, vector<48x32xf32> -> vector<48x32xf32>
    %9 = arith.addf %4, %8 : vector<48x32xf32>
    %c0_6 = arith.constant 0 : index
    %c0_7 = arith.constant 0 : index
    %10 = vector.load %arg4[%c0_6, %c0_7] : memref<1x32xf32, #tpu.memory_space<vmem>>, vector<1x32xf32>
    %11 = vector.broadcast %10 : vector<1x32xf32> to vector<48x32xf32>
    %12 = arith.addf %9, %11 : vector<48x32xf32>
    %cst_8 = arith.constant 0.000000e+00 : f32
    %13 = vector.broadcast %cst_8 : f32 to vector<48x32xf32>
    %14 = arith.maximumf %12, %13 : vector<48x32xf32>
    %15 = arith.truncf %14 : vector<48x32xf32> to vector<48x32xbf16>
    %c0_9 = arith.constant 0 : index
    %c0_10 = arith.constant 0 : index
    %16 = vector.load %arg5[%c0_9, %c0_10] : memref<32x32xbf16, #tpu.memory_space<vmem>>, vector<32x32xbf16>
    %cst_11 = arith.constant dense<0.000000e+00> : vector<48x32xf32>
    %17 = tpu.matmul %15, %16, %cst_11 {dimension_numbers = #tpu.dot_dimension_numbers<[1], [0], [0], [1], [0, 0, 1, 1], [], []>} : vector<48x32xbf16>, vector<32x32xbf16>, vector<48x32xf32> -> vector<48x32xf32>
    %c0_12 = arith.constant 0 : index
    %c0_13 = arith.constant 0 : index
    %18 = vector.load %arg6[%c0_12, %c0_13] : memref<1x32xf32, #tpu.memory_space<vmem>>, vector<1x32xf32>
    %19 = vector.broadcast %18 : vector<1x32xf32> to vector<48x32xf32>
    %20 = arith.addf %17, %19 : vector<48x32xf32>
    %cst_14 = arith.constant 0.000000e+00 : f32
    %21 = vector.broadcast %cst_14 : f32 to vector<48x32xf32>
    %22 = arith.maximumf %20, %21 : vector<48x32xf32>
    %c0_15 = arith.constant 0 : index
    %c0_16 = arith.constant 0 : index
    %23 = vector.load %arg7[%c0_15, %c0_16] : memref<1x32xf32, #tpu.memory_space<vmem>>, vector<1x32xf32>
    %24 = vector.broadcast %23 : vector<1x32xf32> to vector<48x32xf32>
    %25 = arith.mulf %22, %24 : vector<48x32xf32>
    %cst_17 = arith.constant dense<0.000000e+00> : vector<48xf32>
    %26 = vector.multi_reduction <add>, %25, %cst_17 [1] : vector<48x32xf32> to vector<48xf32>
    %27 = vector.shape_cast %26 : vector<48xf32> to vector<48x1xf32>
    %c0_18 = arith.constant 0 : index
    %c0_19 = arith.constant 0 : index
    %28 = vector.load %arg8[%c0_18, %c0_19] : memref<1x1xf32, #tpu.memory_space<vmem>>, vector<1x1xf32>
    %29 = vector.broadcast %28 : vector<1x1xf32> to vector<48x1xf32>
    %30 = arith.addf %27, %29 : vector<48x1xf32>
    %c0_20 = arith.constant 0 : index
    %c0_21 = arith.constant 0 : index
    %31 = vector.load %arg9[%c0_20, %c0_21] : memref<48x1xf32, #tpu.memory_space<vmem>>, vector<48x1xf32>
    tpu.vector_store %arg9[%c0_20, %c0_21], %30 {strides = array<i32>} : memref<48x1xf32, #tpu.memory_space<vmem>>, vector<48x1xf32>,
    return
  }
  func.func @transform_0(%arg0: i32) -> (i32, i32) {
    %c0_i32 = arith.constant 0 : i32
    %c0_i32_0 = arith.constant 0 : i32
    return %arg0, %c0_i32 : i32, i32
  }
  func.func @transform_1(%arg0: i32) -> (i32, i32) {
    %c0_i32 = arith.constant 0 : i32
    %c0_i32_0 = arith.constant 0 : i32
    return %arg0, %c0_i32 : i32, i32
  }
  func.func @transform_2(%arg0: i32) -> (i32, i32) {
    %c0_i32 = arith.constant 0 : i32
    %c0_i32_0 = arith.constant 0 : i32
    %c0_i32_1 = arith.constant 0 : i32
    return %c0_i32, %c0_i32_0 : i32, i32
  }
  func.func @transform_3(%arg0: i32) -> (i32, i32) {
    %c0_i32 = arith.constant 0 : i32
    %c0_i32_0 = arith.constant 0 : i32
    %c0_i32_1 = arith.constant 0 : i32
    return %c0_i32, %c0_i32_0 : i32, i32
  }
  func.func @transform_4(%arg0: i32) -> (i32, i32) {
    %c0_i32 = arith.constant 0 : i32
    %c0_i32_0 = arith.constant 0 : i32
    %c0_i32_1 = arith.constant 0 : i32
    return %c0_i32, %c0_i32_0 : i32, i32
  }
  func.func @transform_5(%arg0: i32) -> (i32, i32) {
    %c0_i32 = arith.constant 0 : i32
    %c0_i32_0 = arith.constant 0 : i32
    %c0_i32_1 = arith.constant 0 : i32
    return %c0_i32, %c0_i32_0 : i32, i32
  }
  func.func @transform_6(%arg0: i32) -> (i32, i32) {
    %c0_i32 = arith.constant 0 : i32
    %c0_i32_0 = arith.constant 0 : i32
    %c0_i32_1 = arith.constant 0 : i32
    return %c0_i32, %c0_i32_0 : i32, i32
  }
  func.func @transform_7(%arg0: i32) -> (i32, i32) {
    %c0_i32 = arith.constant 0 : i32
    %c0_i32_0 = arith.constant 0 : i32
    %c0_i32_1 = arith.constant 0 : i32
    return %c0_i32, %c0_i32_0 : i32, i32
  }
  func.func @transform_8(%arg0: i32) -> (i32, i32) {
    %c0_i32 = arith.constant 0 : i32
    %c0_i32_0 = arith.constant 0 : i32
    return %arg0, %c0_i32 : i32, i32
  }
}

</mosaic_0001>

<bundles_post_ra>
// kernel: tpu_custom_call.1
= control target key start
LH: loop header
LB: loop body
LE: loop exit
PB: predicated region body
PF: predicated region fallthrough
CT: control target
= control target key end

     0   :  { %v406_v3 = vmov 0.0   ;;  %vm407_vm0 = vmmov 0   ;;  %s408_s19 = smov 16   ;;  %vm107_vm1 = vcmask 1041408   ;;  %vm68_vm2 = vcmask 130048   ;;  %s572_s1 = inlined_call_operand.vmem [shape: f32[48,4], index: 1, kind: input, shape index: {}]   ;;  %s573_s2 = inlined_call_operand.vmem [shape: bf16[20,32], index: 2, kind: input, shape index: {}]   ;;  %s574_s0 = inlined_call_operand.vmem [shape: f32[48,16], index: 0, kind: input, shape index: {}]   ;;  %s575_s4 = inlined_call_operand.vmem [shape: bf16[32,32], index: 4, kind: input, shape index: {}]   ;;  %s576_s3 = inlined_call_operand.vmem [shape: f32[1,32], index: 3, kind: input, shape index: {}]   ;;  %s577_s7 = inlined_call_operand.<no memory space> [shape: f32[1,1], index: 7, kind: input, shape index: {}]   ;;  %s578_s5 = inlined_call_operand.vmem [shape: f32[1,32], index: 5, kind: input, shape index: {}]   ;;  %s579_s6 = inlined_call_operand.vmem [shape: f32[1,32], index: 6, kind: input, shape index: {}]   ;;  %s580_s8 = inlined_call_operand.vmem [shape: f32[48,1], index: 8, kind: output, shape index: {}]  }
   0x1   :  { %v38_v0 = vld [vmem:[%s572_s1] sm:$0xff]  ;;  %v39_v1 = vld [vmem:[%s572_s1 + $0x8] sm:$0xff]  ;;  %v40_v2 = vld [vmem:[%s572_s1 + $0x10] sm:$0xff]  ;;  %352 = vmatprep.subr.bf16.mxu0 %v406_v3  ;;  %356 = vmatprep.mubr.msk.bf16.mxu0 %vm407_vm0, %v406_v3  ;;  %vm97_vm3 = vcmask 162816   ;;  %vm200_vm4 = vcmask 261120   ;;  %vm317_vm5 = vcmask 7168  }
   0x2   :  { %v387_v4 = vpack.i.bf16 %v39_v1, %v38_v0  ;;  %v41_v5 = vld [vmem:[%s572_s1 + $0x18] sm:$0xff]  ;;  %v42_v6 = vld [vmem:[%s572_s1 + $0x20] sm:$0xff]  ;;  %v43_v7 = vld [vmem:[%s572_s1 + $0x28] sm:$0xff]  ;;  %368 = vmatprep.subr.bf16.mxu1 %v406_v3  ;;  %372 = vmatprep.mubr.msk.bf16.mxu1 %vm407_vm0, %v406_v3 }
   0x3   :  { %v397_v8 = vpack.i.bf16 %v43_v7, %v42_v6  ;;  %v402_v9 = vld [vmem:[%s573_s2] sm:$0xff]   ;;  %v392_v10 = vpack.i.bf16 %v41_v5, %v40_v2  ;;  %v403_v11 = vld [vmem:[%s573_s2 + $0x8] ss:$0 sps:$4 sm:$0x33]   ;;  %v34_v22 = vld [vmem:[%s574_s0 + $0x10] sm:$0xff] }
   0x4   :  { %388 = vrot.lane.b32.xlu0 %v387_v4, %s408_s19  ;;  %353 = vmatpush3.bf16.msra.mxu0 %v402_v9  ;;  %v109_v12 = vsel %vm107_vm1, %v403_v11, 0  ;;  %v32_v14 = vld [vmem:[%s574_s0] sm:$0xff]  ;;  %v33_v15 = vld [vmem:[%s574_s0 + $0x8] sm:$0xff]  ;;  %v35_v23 = vld [vmem:[%s574_s0 + $0x18] sm:$0xff] }
   0x5   :  { %398 = vrot.lane.b32.xlu1 %v397_v8, %s408_s19  ;;  %354 = vmatprep.subr.bf16.mxu0 %v406_v3  ;;  %v36_v32 = vld [vmem:[%s574_s0 + $0x20] sm:$0xff]  ;;  %v37_v33 = vld [vmem:[%s574_s0 + $0x28] sm:$0xff]  ;;  %v13_v4 = vstv %s577_s7 }
   0x6   :  { %v404_v37 = vld [vmem:[%s575_s4] sm:$0xff]   ;;  %v405_v38 = vld [vmem:[%s575_s4 + $0x8] sm:$0xff]   ;;  %14 = vst [vmem:[#allocation2] sm:$0x1] %v13_v4 }
   0x7   :  { %369 = vmatpush3.bf16.msra.mxu1 %v404_v37  ;;  %v328_v39 = vld [vmem:[%s576_s3] ss:$0 sm:$0xff] }
   0x8   :  { %393 = vrot.lane.b32.xlu0 %v392_v10, %s408_s19  ;;  %355 = vmatpush3.bf16.msra.mxu0 %v109_v12  ;;  %v334_v5 = vld [vmem:[%s578_s5] ss:$0 sm:$0xff] }
   0x9   :  { %370 = vmatprep.subr.bf16.mxu1 %v406_v3  ;;  %v340_v9 = vld [vmem:[%s579_s6] ss:$0 sm:$0xff] }
   0xb   :  { %371 = vmatpush3.bf16.msra.mxu1 %v405_v38 }
  0x76   :  { %v389_v13 = vpop.permute.xlu0 %388 }
  0x77   :  { %v391_v16 = vunpack.i.h.bf16 %v389_v13  ;;  %v390_v17 = vunpack.i.l.bf16 %v389_v13  ;;  %v399_v28 = vpop.permute.xlu1 %398 }
  0x78   :  { %v401_v30 = vunpack.i.h.bf16 %v399_v28  ;;  %v400_v31 = vunpack.i.l.bf16 %v399_v28 }
  0x79   :  { %v69_v18 = vsel %vm68_vm2, %v32_v14, %v390_v17  ;;  %v70_v19 = vsel %vm68_vm2, %v33_v15, %v391_v16 }
  0x7a   :  { %v75_v20 = vpack.c.bf16 %v70_v19, %v69_v18  ;;  %v394_v21 = vpop.permute.xlu0 %393  ;;  %v73_v34 = vsel %vm68_vm2, %v36_v32, %v400_v31  ;;  %v74_v35 = vsel %vm68_vm2, %v37_v33, %v401_v30 }
  0x7b   :  { %v396_v24 = vunpack.i.h.bf16 %v394_v21  ;;  %v395_v25 = vunpack.i.l.bf16 %v394_v21  ;;  %v77_v36 = vpack.c.bf16 %v74_v35, %v73_v34 }
  0x7c   :  { %357 = vmatmul.mubr.msk.bf16.vlgmr.msra.gmra.mrb[0].mxu0 %vm97_vm3, %v75_v20 }
  0x7d   :  { %v71_v26 = vsel %vm68_vm2, %v34_v22, %v395_v25  ;;  %v72_v27 = vsel %vm68_vm2, %v35_v23, %v396_v24  ;;  %360 = vmatprep.mubr.msk.bf16.mxu0 %vm407_vm0, %v406_v3 }
  0x7e   :  { %v76_v29 = vpack.c.bf16 %v72_v27, %v71_v26 }
  0x84   :  { %361 = vmatmul.mubr.msk.bf16.gmra.mrb[4].mxu0 %vm97_vm3, %v76_v29 }
  0x85   :  { %364 = vmatprep.mubr.msk.bf16.mxu0 %vm407_vm0, %v406_v3 }
  0x8c   :  { %365 = vmatmul.mubr.msk.bf16.gmra.mrb[8].mxu0 %vm97_vm3, %v77_v36 }
 0x14f   :  { %v145_v40 = vpop.f32.mrb[0].mxu0 }
 0x150   :  { %v146_v41 = vadd.f32 %v328_v39, %v145_v40  ;;  %v358_v42 = vpop.f32.mrb[1].mxu0 }
 0x151   :  { %v148_v43 = vpop.f32.mrb[2].mxu0  ;;  %v341_v42 = vld [vmem:[#allocation2] ss:$0 sm:$0xff] }
 0x152   :  { %v149_v44 = vadd.f32 %v328_v39, %v148_v43  ;;  %v359_v45 = vpop.f32.mrb[3].mxu0  ;;  %v168_v46 = vmax.f32 %v146_v41, 0.0 }
 0x154   :  { %v169_v47 = vmax.f32 %v149_v44, 0.0 }
 0x156   :  { %v174_v48 = vpack.c.bf16 %v169_v47, %v168_v46 }
 0x157   :  { %v153_v49 = vpop.f32.mrb[4].mxu0 }
 0x158   :  { %v154_v50 = vadd.f32 %v328_v39, %v153_v49  ;;  %v362_v51 = vpop.f32.mrb[5].mxu0  ;;  %373 = vmatmul.mubr.msk.bf16.vlgmr.msra.gmra.mrb[0].mxu1 %vm200_vm4, %v174_v48 }
 0x159   :  { %v156_v52 = vpop.f32.mrb[6].mxu0  ;;  %376 = vmatprep.mubr.msk.bf16.mxu1 %vm407_vm0, %v406_v3 }
 0x15a   :  { %v157_v53 = vadd.f32 %v328_v39, %v156_v52  ;;  %v363_v54 = vpop.f32.mrb[7].mxu0  ;;  %v170_v55 = vmax.f32 %v154_v50, 0.0 }
 0x15c   :  { %v171_v56 = vmax.f32 %v157_v53, 0.0 }
 0x15e   :  { %v175_v57 = vpack.c.bf16 %v171_v56, %v170_v55 }
 0x15f   :  { %v161_v58 = vpop.f32.mrb[8].mxu0 }
 0x160   :  { %v162_v59 = vadd.f32 %v328_v39, %v161_v58  ;;  %v366_v60 = vpop.f32.mrb[9].mxu0  ;;  %377 = vmatmul.mubr.msk.bf16.gmra.mrb[4].mxu1 %vm200_vm4, %v175_v57 }
 0x161   :  { %v164_v61 = vpop.f32.mrb[10].mxu0  ;;  %380 = vmatprep.mubr.msk.bf16.mxu1 %vm407_vm0, %v406_v3 }
 0x162   :  { %v165_v62 = vadd.f32 %v328_v39, %v164_v61  ;;  %v367_v63 = vpop.f32.mrb[11].mxu0  ;;  %v172_v0 = vmax.f32 %v162_v59, 0.0 }
 0x164   :  { %v173_v1 = vmax.f32 %v165_v62, 0.0 }
 0x166   :  { %v176_v2 = vpack.c.bf16 %v173_v1, %v172_v0 }
 0x168   :  { %381 = vmatmul.mubr.msk.bf16.gmra.mrb[8].mxu1 %vm200_vm4, %v176_v2 }
 0x22b   :  { %v244_v6 = vpop.f32.mrb[0].mxu1 }
 0x22c   :  { %v245_v7 = vadd.f32 %v334_v5, %v244_v6  ;;  %v374_v8 = vpop.f32.mrb[1].mxu1 }
 0x22d   :  { %v247_v3 = vpop.f32.mrb[2].mxu1 }
 0x22e   :  { %v267_v10 = vmax.f32 %v245_v7, 0.0  ;;  %v248_v11 = vadd.f32 %v334_v5, %v247_v3  ;;  %v375_v12 = vpop.f32.mrb[3].mxu1 }
 0x230   :  { %v268_v13 = vmax.f32 %v248_v11, 0.0  ;;  %v280_v14 = vmul.f32 %v340_v9, %v267_v10 }
 0x232   :  { %v286_v15 = vsel %vm200_vm4, %v280_v14, 0.0  ;;  %v281_v16 = vmul.f32 %v340_v9, %v268_v13 }
 0x233   :  { %287 = vadd.xlane.f32.xlu1 %v286_v15  ;;  %v252_v17 = vpop.f32.mrb[4].mxu1 }
 0x234   :  { %v253_v18 = vadd.f32 %v334_v5, %v252_v17  ;;  %v378_v19 = vpop.f32.mrb[5].mxu1  ;;  %v289_v20 = vsel %vm200_vm4, %v281_v16, 0.0 }
 0x235   :  { %290 = vadd.xlane.f32.xlu0 %v289_v20  ;;  %v255_v21 = vpop.f32.mrb[6].mxu1 }
 0x236   :  { %v269_v22 = vmax.f32 %v253_v18, 0.0  ;;  %v256_v23 = vadd.f32 %v334_v5, %v255_v21  ;;  %v379_v24 = vpop.f32.mrb[7].mxu1 }
 0x238   :  { %v270_v25 = vmax.f32 %v256_v23, 0.0  ;;  %v282_v26 = vmul.f32 %v340_v9, %v269_v22 }
 0x23a   :  { %v292_v27 = vsel %vm200_vm4, %v282_v26, 0.0  ;;  %v283_v28 = vmul.f32 %v340_v9, %v270_v25 }
 0x23b   :  { %293 = vadd.xlane.f32.xlu0 %v292_v27  ;;  %v260_v29 = vpop.f32.mrb[8].mxu1 }
 0x23c   :  { %v261_v30 = vadd.f32 %v334_v5, %v260_v29  ;;  %v382_v31 = vpop.f32.mrb[9].mxu1  ;;  %v295_v32 = vsel %vm200_vm4, %v283_v28, 0.0 }
 0x23d   :  { %296 = vadd.xlane.f32.xlu1 %v295_v32  ;;  %v263_v33 = vpop.f32.mrb[10].mxu1 }
 0x23e   :  { %v271_v34 = vmax.f32 %v261_v30, 0.0  ;;  %v264_v35 = vadd.f32 %v334_v5, %v263_v33  ;;  %v383_v36 = vpop.f32.mrb[11].mxu1 }
 0x240   :  { %v272_v37 = vmax.f32 %v264_v35, 0.0  ;;  %v284_v38 = vmul.f32 %v340_v9, %v271_v34 }
 0x242   :  { %v298_v39 = vsel %vm200_vm4, %v284_v38, 0.0  ;;  %v285_v40 = vmul.f32 %v340_v9, %v272_v37 }
 0x243   :  { %299 = vadd.xlane.f32.xlu0 %v298_v39 }
 0x244   :  { %v301_v41 = vsel %vm200_vm4, %v285_v40, 0.0 }
 0x245   :  { %302 = vadd.xlane.f32.xlu1 %v301_v41 }
 0x2c0   :  { %v288_v43 = vpop.xlane.xlu1 %287 }
 0x2c1   :  { %v311_v44 = vadd.f32 %v341_v42, %v288_v43 }
 0x2c2   :  { %v291_v45 = vpop.xlane.xlu0 %290 }
 0x2c3   :  { %318 = vst.msk [vmem:[%s580_s8] sm:$0xff] %vm317_vm5, %v311_v44  ;;  %v312_v46 = vadd.f32 %v341_v42, %v291_v45 }
 0x2c5   :  { %319 = vst.msk [vmem:[%s580_s8 + $0x8] sm:$0xff] %vm317_vm5, %v312_v46 }
 0x2c8   :  { %v294_v47 = vpop.xlane.xlu0 %293 }
 0x2c9   :  { %v313_v48 = vadd.f32 %v341_v42, %v294_v47 }
 0x2ca   :  { %v297_v49 = vpop.xlane.xlu1 %296 }
 0x2cb   :  { %320 = vst.msk [vmem:[%s580_s8 + $0x10] sm:$0xff] %vm317_vm5, %v313_v48  ;;  %v314_v50 = vadd.f32 %v341_v42, %v297_v49 }
 0x2cd   :  { %321 = vst.msk [vmem:[%s580_s8 + $0x18] sm:$0xff] %vm317_vm5, %v314_v50 }
 0x2d0   :  { %v300_v51 = vpop.xlane.xlu0 %299 }
 0x2d1   :  { %v315_v52 = vadd.f32 %v341_v42, %v300_v51 }
 0x2d2   :  { %v303_v53 = vpop.xlane.xlu1 %302 }
 0x2d3   :  { %322 = vst.msk [vmem:[%s580_s8 + $0x20] sm:$0xff] %vm317_vm5, %v315_v52  ;;  %v316_v54 = vadd.f32 %v341_v42, %v303_v53 }
 0x2d5   :  { %323 = vst.msk [vmem:[%s580_s8 + $0x28] sm:$0xff] %vm317_vm5, %v316_v54 }

// kernel: tpu_custom_call.1
= control target key start
LH: loop header
LB: loop body
LE: loop exit
PB: predicated region body
PF: predicated region fallthrough
CT: control target
= control target key end

     0   :  { %vm63_vm0 = vcmask 1041408   ;;  %v450_v0 = vmov 0.0   ;;  %vm451_vm1 = vmmov 0   ;;  %vm53_vm2 = vcmask 31744   ;;  %s616_s2 = inlined_call_operand.vmem [shape: bf16[20,32], index: 2, kind: input, shape index: {}]   ;;  %s617_s1 = inlined_call_operand.vmem [shape: f32[48,4], index: 1, kind: input, shape index: {}]   ;;  %s618_s0 = inlined_call_operand.vmem [shape: f32[48,16], index: 0, kind: input, shape index: {}]   ;;  %s619_s4 = inlined_call_operand.vmem [shape: bf16[32,32], index: 4, kind: input, shape index: {}]   ;;  %s620_s3 = inlined_call_operand.vmem [shape: f32[1,32], index: 3, kind: input, shape index: {}]   ;;  %s621_s7 = inlined_call_operand.<no memory space> [shape: f32[1,1], index: 7, kind: input, shape index: {}]   ;;  %s622_s5 = inlined_call_operand.vmem [shape: f32[1,32], index: 5, kind: input, shape index: {}]   ;;  %s623_s6 = inlined_call_operand.vmem [shape: f32[1,32], index: 6, kind: input, shape index: {}]   ;;  %s624_s8 = inlined_call_operand.vmem [shape: f32[48,1], index: 8, kind: output, shape index: {}]  }
   0x1   :  { %443 = vmatprep.subr.bf16.mxu1 %v450_v0  ;;  %v34_v1 = vld [vmem:[%s616_s2 + $0x8] sm:$0x3]  ;;  %405 = vmatprep.mubr.msk.bf16.mxu1 %vm451_vm1, %v450_v0  ;;  %v46_v3 = vld [vmem:[%s617_s1 + $0x10] sm:$0xff]  ;;  %v47_v4 = vld [vmem:[%s617_s1 + $0x18] sm:$0xff]  ;;  %vm130_vm3 = vcmask 130048   ;;  %vm242_vm4 = vcmask 261120  }
   0x2   :  { %v65_v2 = vsel %vm63_vm0, %v34_v1, 0  ;;  %399 = vmatprep.subr.bf16.mxu0 %v450_v0  ;;  %401 = vmatprep.mubr.msk.bf16.mxu0 %vm451_vm1, %v450_v0  ;;  %v447_v5 = vld [vmem:[%s616_s2] sm:$0xff]   ;;  %v51_v6 = vpack.c.bf16 %v47_v4, %v46_v3  ;;  %v45_v8 = vld [vmem:[%s617_s1 + $0x8] sm:$0xff]  ;;  %v37_v16 = vld [vmem:[%s618_s0 + $0x10] sm:$0xff]  ;;  %vm359_vm5 = vcmask 7168  }
   0x3   :  { %444 = vmatpush3.bf16.msra.mxu1 %v65_v2  ;;  %400 = vmatpush3.bf16.msra.mxu0 %v65_v2  ;;  %v44_v7 = vld [vmem:[%s617_s1] sm:$0xff]  ;;  %v49_v11 = vld [vmem:[%s617_s1 + $0x28] sm:$0xff]  ;;  %v38_v17 = vld [vmem:[%s618_s0 + $0x18] sm:$0xff] }
   0x4   :  { %413 = vmatprep.subr.bf16.mxu1 %v450_v0  ;;  %427 = vmatprep.subr.bf16.mxu0 %v450_v0  ;;  %v50_v9 = vpack.c.bf16 %v45_v8, %v44_v7  ;;  %v48_v10 = vld [vmem:[%s617_s1 + $0x20] sm:$0xff]  ;;  %v36_v14 = vld [vmem:[%s618_s0 + $0x8] sm:$0xff]  ;;  %v42_v18 = vpack.c.bf16 %v38_v17, %v37_v16  ;;  %v13_v7 = vstv %s621_s7 }
   0x5   :  { %v52_v12 = vpack.c.bf16 %v49_v11, %v48_v10  ;;  %v35_v13 = vld [vmem:[%s618_s0] sm:$0xff]  ;;  %v40_v20 = vld [vmem:[%s618_s0 + $0x28] sm:$0xff]  ;;  %14 = vst [vmem:[#allocation2] sm:$0x1] %v13_v7 }
   0x6   :  { %406 = vmatmul.mubr.msk.bf16.vlgmr.msra.gmra.mrb[0].mxu1 %vm53_vm2, %v51_v6  ;;  %402 = vmatmul.mubr.msk.bf16.vlgmr.msra.gmra.mrb[0].mxu0 %vm53_vm2, %v50_v9  ;;  %v41_v15 = vpack.c.bf16 %v36_v14, %v35_v13  ;;  %v39_v19 = vld [vmem:[%s618_s0 + $0x20] sm:$0xff]  ;;  %v449_v23 = vld [vmem:[%s619_s4 + $0x8] sm:$0xff]  }
   0x7   :  { %414 = vmatpush3.bf16.msra.mxu1 %v447_v5  ;;  %409 = vmatprep.mubr.msk.bf16.mxu1 %vm451_vm1, %v450_v0  ;;  %v43_v21 = vpack.c.bf16 %v40_v20, %v39_v19  ;;  %v448_v22 = vld [vmem:[%s619_s4] sm:$0xff]  }
   0x8   :  { %431 = vmatprep.mubr.msk.bf16.mxu0 %vm451_vm1, %v450_v0  ;;  %428 = vmatpush3.bf16.msra.mxu0 %v448_v22  ;;  %v377_v37 = vld [vmem:[%s620_s3] ss:$0 sm:$0xff] }
   0x9   :  { %429 = vmatprep.subr.bf16.mxu0 %v450_v0  ;;  %v378_v8 = vld [vmem:[%s622_s5] ss:$0 sm:$0xff] }
   0xc   :  { %430 = vmatpush3.bf16.msra.mxu0 %v449_v23 }
   0xe   :  { %410 = vmatmul.mubr.msk.bf16.gmra.mrb[4].mxu1 %vm53_vm2, %v52_v12 }
   0xf   :  { %415 = vmatprep.mubr.msk.bf16.mxu1 %vm451_vm1, %v450_v0 }
  0x16   :  { %416 = vmatmul.mubr.msk.bf16.vlgmr.msra.gmra.mrb[8].mxu1 %vm130_vm3, %v41_v15 }
  0x17   :  { %419 = vmatprep.mubr.msk.bf16.mxu1 %vm451_vm1, %v450_v0 }
  0x1e   :  { %420 = vmatmul.mubr.msk.bf16.gmra.mrb[12].mxu1 %vm130_vm3, %v42_v18 }
  0x1f   :  { %423 = vmatprep.mubr.msk.bf16.mxu1 %vm451_vm1, %v450_v0 }
  0x26   :  { %424 = vmatmul.mubr.msk.bf16.gmra.mrb[16].mxu1 %vm130_vm3, %v43_v21 }
  0xd9   :  { %v109_v24 = vpop.f32.mrb[0].mxu1  ;;  %v101_v27 = vpop.f32.mrb[0].mxu0 }
  0xda   :  { %v407_v25 = vpop.f32.mrb[1].mxu1  ;;  %v403_v29 = vpop.f32.mrb[1].mxu0 }
  0xdb   :  { %v112_v26 = vpop.f32.mrb[2].mxu1  ;;  %v104_v30 = vpop.f32.mrb[2].mxu0 }
  0xdc   :  { %v408_v28 = vpop.f32.mrb[3].mxu1  ;;  %v404_v31 = vpop.f32.mrb[3].mxu0 }
  0xe1   :  { %v117_v32 = vpop.f32.mrb[4].mxu1 }
  0xe2   :  { %v411_v33 = vpop.f32.mrb[5].mxu1 }
  0xe3   :  { %v120_v34 = vpop.f32.mrb[6].mxu1 }
  0xe4   :  { %v412_v35 = vpop.f32.mrb[7].mxu1 }
  0xe9   :  { %v174_v36 = vpop.f32.mrb[8].mxu1 }
  0xea   :  { %v175_v38 = vadd.f32 %v174_v36, %v101_v27  ;;  %v417_v39 = vpop.f32.mrb[9].mxu1 }
  0xeb   :  { %v177_v40 = vpop.f32.mrb[10].mxu1 }
  0xec   :  { %v204_v41 = vadd.f32 %v377_v37, %v175_v38  ;;  %v178_v42 = vadd.f32 %v177_v40, %v104_v30  ;;  %v418_v43 = vpop.f32.mrb[11].mxu1 }
  0xee   :  { %v205_v44 = vadd.f32 %v377_v37, %v178_v42  ;;  %v210_v45 = vmax.f32 %v204_v41, 0.0 }
  0xf0   :  { %v211_v46 = vmax.f32 %v205_v44, 0.0 }
  0xf1   :  { %v182_v47 = vpop.f32.mrb[12].mxu1 }
  0xf2   :  { %v216_v48 = vpack.c.bf16 %v211_v46, %v210_v45  ;;  %v183_v49 = vadd.f32 %v182_v47, %v109_v24  ;;  %v421_v50 = vpop.f32.mrb[13].mxu1  ;;  %v385_v45 = vld [vmem:[#allocation2] ss:$0 sm:$0xff] }
  0xf3   :  { %v185_v51 = vpop.f32.mrb[14].mxu1 }
  0xf4   :  { %v206_v52 = vadd.f32 %v377_v37, %v183_v49  ;;  %v186_v53 = vadd.f32 %v185_v51, %v112_v26  ;;  %v422_v54 = vpop.f32.mrb[15].mxu1  ;;  %432 = vmatmul.mubr.msk.bf16.vlgmr.msra.gmra.mrb[4].mxu0 %vm242_vm4, %v216_v48 }
  0xf5   :  { %435 = vmatprep.mubr.msk.bf16.mxu0 %vm451_vm1, %v450_v0 }
  0xf6   :  { %v207_v55 = vadd.f32 %v377_v37, %v186_v53  ;;  %v212_v56 = vmax.f32 %v206_v52, 0.0 }
  0xf8   :  { %v213_v57 = vmax.f32 %v207_v55, 0.0 }
  0xf9   :  { %v190_v58 = vpop.f32.mrb[16].mxu1 }
  0xfa   :  { %v217_v59 = vpack.c.bf16 %v213_v57, %v212_v56  ;;  %v191_v60 = vadd.f32 %v190_v58, %v117_v32  ;;  %v425_v61 = vpop.f32.mrb[17].mxu1 }
  0xfb   :  { %v193_v62 = vpop.f32.mrb[18].mxu1 }
  0xfc   :  { %v208_v63 = vadd.f32 %v377_v37, %v191_v60  ;;  %v194_v1 = vadd.f32 %v193_v62, %v120_v34  ;;  %v426_v2 = vpop.f32.mrb[19].mxu1  ;;  %436 = vmatmul.mubr.msk.bf16.gmra.mrb[8].mxu0 %vm242_vm4, %v217_v59 }
  0xfd   :  { %439 = vmatprep.mubr.msk.bf16.mxu0 %vm451_vm1, %v450_v0  ;;  %v384_v0 = vld [vmem:[%s623_s6] ss:$0 sm:$0xff] }
  0xfe   :  { %v209_v3 = vadd.f32 %v377_v37, %v194_v1  ;;  %v214_v4 = vmax.f32 %v208_v63, 0.0 }
 0x100   :  { %v215_v5 = vmax.f32 %v209_v3, 0.0 }
 0x102   :  { %v218_v6 = vpack.c.bf16 %v215_v5, %v214_v4 }
 0x104   :  { %440 = vmatmul.mubr.msk.bf16.gmra.mrb[12].mxu0 %vm242_vm4, %v218_v6 }
 0x1c7   :  { %v286_v9 = vpop.f32.mrb[4].mxu0 }
 0x1c8   :  { %v287_v10 = vadd.f32 %v378_v8, %v286_v9  ;;  %v433_v11 = vpop.f32.mrb[5].mxu0 }
 0x1c9   :  { %v289_v12 = vpop.f32.mrb[6].mxu0 }
 0x1ca   :  { %v309_v13 = vmax.f32 %v287_v10, 0.0  ;;  %v290_v14 = vadd.f32 %v378_v8, %v289_v12  ;;  %v434_v15 = vpop.f32.mrb[7].mxu0 }
 0x1cc   :  { %v310_v16 = vmax.f32 %v290_v14, 0.0  ;;  %v322_v17 = vmul.f32 %v384_v0, %v309_v13 }
 0x1ce   :  { %v328_v18 = vsel %vm242_vm4, %v322_v17, 0.0  ;;  %v323_v19 = vmul.f32 %v384_v0, %v310_v16 }
 0x1cf   :  { %329 = vadd.xlane.f32.xlu0 %v328_v18  ;;  %v294_v20 = vpop.f32.mrb[8].mxu0 }
 0x1d0   :  { %v295_v21 = vadd.f32 %v378_v8, %v294_v20  ;;  %v437_v22 = vpop.f32.mrb[9].mxu0  ;;  %v331_v27 = vsel %vm242_vm4, %v323_v19, 0.0 }
 0x1d1   :  { %v297_v23 = vpop.f32.mrb[10].mxu0 }
 0x1d2   :  { %v311_v24 = vmax.f32 %v295_v21, 0.0  ;;  %v298_v25 = vadd.f32 %v378_v8, %v297_v23  ;;  %v438_v26 = vpop.f32.mrb[11].mxu0 }
 0x1d3   :  { %332 = vadd.xlane.f32.xlu0 %v331_v27 }
 0x1d4   :  { %v312_v28 = vmax.f32 %v298_v25, 0.0  ;;  %v324_v29 = vmul.f32 %v384_v0, %v311_v24 }
 0x1d6   :  { %v334_v30 = vsel %vm242_vm4, %v324_v29, 0.0  ;;  %v325_v31 = vmul.f32 %v384_v0, %v312_v28 }
 0x1d7   :  { %335 = vadd.xlane.f32.xlu1 %v334_v30  ;;  %v302_v32 = vpop.f32.mrb[12].mxu0 }
 0x1d8   :  { %v303_v33 = vadd.f32 %v378_v8, %v302_v32  ;;  %v441_v34 = vpop.f32.mrb[13].mxu0  ;;  %v337_v39 = vsel %vm242_vm4, %v325_v31, 0.0 }
 0x1d9   :  { %v305_v35 = vpop.f32.mrb[14].mxu0 }
 0x1da   :  { %v313_v36 = vmax.f32 %v303_v33, 0.0  ;;  %v306_v37 = vadd.f32 %v378_v8, %v305_v35  ;;  %v442_v38 = vpop.f32.mrb[15].mxu0 }
 0x1db   :  { %338 = vadd.xlane.f32.xlu1 %v337_v39 }
 0x1dc   :  { %v314_v40 = vmax.f32 %v306_v37, 0.0  ;;  %v326_v41 = vmul.f32 %v384_v0, %v313_v36 }
 0x1de   :  { %v340_v42 = vsel %vm242_vm4, %v326_v41, 0.0  ;;  %v327_v43 = vmul.f32 %v384_v0, %v314_v40 }
 0x1df   :  { %341 = vadd.xlane.f32.xlu0 %v340_v42 }
 0x1e0   :  { %v343_v44 = vsel %vm242_vm4, %v327_v43, 0.0 }
 0x1e1   :  { %344 = vadd.xlane.f32.xlu1 %v343_v44 }
 0x25c   :  { %v330_v46 = vpop.xlane.xlu0 %329 }
 0x25d   :  { %v353_v47 = vadd.f32 %v385_v45, %v330_v46 }
 0x25f   :  { %360 = vst.msk [vmem:[%s624_s8] sm:$0xff] %vm359_vm5, %v353_v47 }
 0x260   :  { %v333_v48 = vpop.xlane.xlu0 %332 }
 0x261   :  { %v354_v49 = vadd.f32 %v385_v45, %v333_v48 }
 0x263   :  { %361 = vst.msk [vmem:[%s624_s8 + $0x8] sm:$0xff] %vm359_vm5, %v354_v49 }
 0x264   :  { %v336_v50 = vpop.xlane.xlu1 %335 }
 0x265   :  { %v355_v51 = vadd.f32 %v385_v45, %v336_v50 }
 0x267   :  { %362 = vst.msk [vmem:[%s624_s8 + $0x10] sm:$0xff] %vm359_vm5, %v355_v51 }
 0x268   :  { %v339_v52 = vpop.xlane.xlu1 %338 }
 0x269   :  { %v356_v53 = vadd.f32 %v385_v45, %v339_v52 }
 0x26b   :  { %363 = vst.msk [vmem:[%s624_s8 + $0x18] sm:$0xff] %vm359_vm5, %v356_v53 }
 0x26c   :  { %v342_v54 = vpop.xlane.xlu0 %341 }
 0x26d   :  { %v357_v55 = vadd.f32 %v385_v45, %v342_v54 }
 0x26e   :  { %v345_v56 = vpop.xlane.xlu1 %344 }
 0x26f   :  { %364 = vst.msk [vmem:[%s624_s8 + $0x20] sm:$0xff] %vm359_vm5, %v357_v55  ;;  %v358_v57 = vadd.f32 %v385_v45, %v345_v56 }
 0x271   :  { %365 = vst.msk [vmem:[%s624_s8 + $0x28] sm:$0xff] %vm359_vm5, %v358_v57 }

</bundles_post_ra>
